<compile_context>
chip_gen: v7x
topology: tpu7x:2x2x1
jax: 0.10.0
libtpu: 0.0.40
codegen_flags: <defaults>
</compile_context>

<pallas_src>
import functools

import jax
import jax.numpy as jnp
from jax.experimental import pallas as pl
from jax.experimental.pallas import tpu as pltpu

D_MODEL = 32
NUM_HEADS = 4
HEAD_DIM = D_MODEL // NUM_HEADS
FF_DIM = 128
LN_EPS = 1e-5


def _layernorm(x, gamma, beta):
    # PyTorch LayerNorm: biased variance over the last dim, eps=1e-5.
    mu = jnp.mean(x, axis=-1, keepdims=True)
    var = jnp.mean((x - mu) ** 2, axis=-1, keepdims=True)
    inv = jax.lax.rsqrt(var + LN_EPS)
    return (x - mu) * inv * gamma + beta


def attention_block_kernel(
    x_ref,       # (B*S, D)
    wqkv_ref,    # (D, 3D)  [Wq*scale | Wk | Wv], lane-dense
    wo_ref,      # (D, D)   fused out_proj @ extra-linear (rows = head-major)
    w1_ref,      # (D, FF)  ffn.linear1 (x @ W layout)
    b1_ref,      # (1, FF)
    w2_ref,      # (FF, D)  ffn.linear2
    vec_ref,     # (7, D): [bq*scale, b_attn_fused, ln1.g, ln1.b, ffn.b2, ffn.ln.g, ffn.ln.b]
    o_ref,       # (B*S, D)
    attn_acc,    # VMEM scratch (B*S, D) f32
    *, batch, seq,
):
    x = x_ref[...].astype(jnp.float32)                  # (B*S, D)
    vecs = vec_ref[...]                                  # (7, D)
    bq, b_attn = vecs[0:1], vecs[1:2]
    g1, bt1 = vecs[2:3], vecs[3:4]
    b2, g2, bt2 = vecs[4:5], vecs[5:6], vecs[6:7]

    # --- fused QKV projection: one lane-dense matmul -------------------------
    qkv = jnp.dot(x, wqkv_ref[...], preferred_element_type=jnp.float32)  # (B*S, 3D)
    q_all = qkv[:, 0:D_MODEL] + bq          # pre-scaled Q bias (K bias cancels,
    k_all = qkv[:, D_MODEL:2 * D_MODEL]     #  V bias folded into b_attn)
    v_all = qkv[:, 2 * D_MODEL:3 * D_MODEL]

    # --- multi-head self-attention (static unroll over batch x heads) --------
    for b in range(batch):
        r0 = b * seq
        qb = q_all[r0:r0 + seq, :]
        kb = k_all[r0:r0 + seq, :]
        vb = v_all[r0:r0 + seq, :]
        head_outs = []
        for h in range(NUM_HEADS):
            c0 = h * HEAD_DIM
            qh = qb[:, c0:c0 + HEAD_DIM]                  # (S, hd) static lane slice
            kh = kb[:, c0:c0 + HEAD_DIM]
            vh = vb[:, c0:c0 + HEAD_DIM]
            # scores: contract last axes directly (no materialized K^T)
            s = jax.lax.dot_general(
                qh, kh, (((1,), (1,)), ((), ())),
                preferred_element_type=jnp.float32)       # (S, S)
            s = s - jnp.max(s, axis=-1, keepdims=True)
            p = jnp.exp(s)
            p = p / jnp.sum(p, axis=-1, keepdims=True)    # exact divide (tiny column)
            head_outs.append(jnp.dot(p, vh, preferred_element_type=jnp.float32))
        # lane-dense (S, H*hd) slab -> one matmul against fused output proj
        hb = jnp.concatenate(head_outs, axis=-1)          # (S, D)
        attn_acc[r0:r0 + seq, :] = jnp.dot(
            hb, wo_ref[...], preferred_element_type=jnp.float32)

    attn = attn_acc[...] + b_attn            # fused out_proj/linear/V bias

    # residual + LayerNorm 1  (dropout = identity)
    y = _layernorm(x + attn, g1, bt1)

    # --- feed-forward sub-layer ----------------------------------------------
    hid = jnp.dot(y, w1_ref[...], preferred_element_type=jnp.float32) + b1_ref[...]
    hid = jnp.maximum(hid, 0.0)               # ReLU; dropout = identity
    hid = jnp.dot(hid, w2_ref[...], preferred_element_type=jnp.float32) + b2

    o_ref[...] = _layernorm(y + hid, g2, bt2).astype(o_ref.dtype)


def prepare_kernel_inputs(params):
    """Wrapper-side (free) algebra: fuse Q/K/V into one lane-dense weight,
    pre-scale Q, drop/fold K/V biases, fuse out_proj with the extra linear,
    and pack the small vectors into one (7, D) slab."""
    (w_in, b_in, w_out, b_out, w_lin, b_lin, g1, bt1,
     w1, b1, w2, b2, g2, bt2) = params
    scale = 1.0 / jnp.sqrt(jnp.float32(HEAD_DIM))

    wq = w_in[:, 0 * D_MODEL:1 * D_MODEL] * scale
    wk = w_in[:, 1 * D_MODEL:2 * D_MODEL]
    wv = w_in[:, 2 * D_MODEL:3 * D_MODEL]
    bq = b_in[:, 0 * D_MODEL:1 * D_MODEL] * scale   # (1, D) pre-scaled Q bias
    bv = b_in[:, 2 * D_MODEL:3 * D_MODEL]           # (1, D) V bias (folded below)
    # K bias dropped: adds a per-query-row constant to scores -> cancels in softmax.

    w_qkv = jnp.concatenate([wq, wk, wv], axis=-1)  # (D, 3D) lane-dense

    # fuse out_proj with the extra linear; fold the V-projection bias in too
    w_fused = w_out @ w_lin                          # (D, D); rows are head-major
    b_fused = bv @ w_fused + b_out @ w_lin + b_lin   # (1, D)

    vec_slab = jnp.concatenate([bq, b_fused, g1, bt1, b2, g2, bt2], axis=0)  # (7, D)
    return (w_qkv, w_fused, w1, b1, w2, vec_slab)


def attention_block(x, params):
    B, S, D = x.shape
    assert D == D_MODEL
    kin = prepare_kernel_inputs(params)
    x2d = x.reshape(B * S, D)                        # free layout plumbing

    out2d = pl.pallas_call(
        functools.partial(attention_block_kernel, batch=B, seq=S),
        out_shape=jax.ShapeDtypeStruct((B * S, D), x.dtype),
        scratch_shapes=[pltpu.VMEM((B * S, D), jnp.float32)],
        # no grid: whole problem (a few KiB) fits in VMEM in one step,
        # avoiding the ~0.35 us per-grid-step pipeline overhead.
    )(x2d, *kin)
    return out2d.reshape(B, S, D)


def make_params(key):
    """Deterministic synthetic parameters matching AttentionBlock(__init__) shapes.
    Weights are stored pre-transposed so math is x @ W + b."""
    ks = jax.random.split(key, 8)
    sc = 0.05
    w_in = sc * jax.random.normal(ks[0], (D_MODEL, 3 * D_MODEL), jnp.float32)
    b_in = sc * jax.random.normal(ks[1], (1, 3 * D_MODEL), jnp.float32)
    w_out = sc * jax.random.normal(ks[2], (D_MODEL, D_MODEL), jnp.float32)
    b_out = sc * jax.random.normal(ks[3], (1, D_MODEL), jnp.float32)
    w_lin = sc * jax.random.normal(ks[4], (D_MODEL, D_MODEL), jnp.float32)
    b_lin = sc * jax.random.normal(ks[5], (1, D_MODEL), jnp.float32)
    g1 = jnp.ones((1, D_MODEL), jnp.float32)
    bt1 = jnp.zeros((1, D_MODEL), jnp.float32)
    w1 = sc * jax.random.normal(ks[6], (D_MODEL, FF_DIM), jnp.float32)
    b1 = jnp.zeros((1, FF_DIM), jnp.float32)
    w2 = sc * jax.random.normal(ks[7], (FF_DIM, D_MODEL), jnp.float32)
    b2 = jnp.zeros((1, D_MODEL), jnp.float32)
    g2 = jnp.ones((1, D_MODEL), jnp.float32)
    bt2 = jnp.zeros((1, D_MODEL), jnp.float32)
    return (w_in, b_in, w_out, b_out, w_lin, b_lin, g1, bt1,
            w1, b1, w2, b2, g2, bt2)


def reference(x, params):
    """Plain-JAX reference mirroring the PyTorch forward (dropout = identity),
    using the UNFUSED parameters — validates the wrapper-side algebra too."""
    (w_in, b_in, w_out, b_out, w_lin, b_lin, g1, bt1,
     w1, b1, w2, b2, g2, bt2) = params

    def ln(v, g, b):
        mu = jnp.mean(v, axis=-1, keepdims=True)
        var = jnp.mean((v - mu) ** 2, axis=-1, keepdims=True)
        return (v - mu) / jnp.sqrt(var + LN_EPS) * g + b

    qkv = x @ w_in + b_in
    q, k, v = jnp.split(qkv, 3, axis=-1)
    B, S, _ = x.shape

    def split_heads(t):  # (B,S,D) -> (B,H,S,hd)
        return t.reshape(B, S, NUM_HEADS, HEAD_DIM).transpose(0, 2, 1, 3)

    qh, kh, vh = split_heads(q), split_heads(k), split_heads(v)
    s = jnp.einsum("bhqd,bhkd->bhqk", qh, kh) / jnp.sqrt(HEAD_DIM)
    p = jax.nn.softmax(s, axis=-1)
    a = jnp.einsum("bhqk,bhkd->bhqd", p, vh).transpose(0, 2, 1, 3).reshape(B, S, D_MODEL)
    a = a @ w_out + b_out
    a = a @ w_lin + b_lin
    y = ln(x + a, g1, bt1)
    hid = jnp.maximum(y @ w1 + b1, 0.0)
    hid = hid @ w2 + b2
    return ln(y + hid, g2, bt2)


if __name__ == "__main__":
    key = jax.random.PRNGKey(0)
    kx, kp = jax.random.split(key)
    B, S = 2, 8
    x = jax.random.normal(kx, (B, S, D_MODEL), jnp.float32)
    params = make_params(kp)

    out = jax.block_until_ready(attention_block(x, params))
    ref = reference(x, params)

    assert out.shape == (B, S, D_MODEL)
    # exact softmax divide now -> tolerance tightened vs previous 2e-3
    assert jnp.max(jnp.abs(out - ref)) < 1e-3, "mismatch vs reference"
    print("KERNEL_OK")
</pallas_src>

<mosaic_0001>
module attributes {stable_mosaic.version = 11 : i64} {
  func.func @attention_block_kernel(%arg0: memref<16x32xf32, #tpu.memory_space<vmem>>, %arg1: memref<32x96xf32, #tpu.memory_space<vmem>>, %arg2: memref<32x32xf32, #tpu.memory_space<vmem>>, %arg3: memref<32x128xf32, #tpu.memory_space<vmem>>, %arg4: memref<1x128xf32, #tpu.memory_space<vmem>>, %arg5: memref<128x32xf32, #tpu.memory_space<vmem>>, %arg6: memref<7x32xf32, #tpu.memory_space<vmem>>, %arg7: memref<16x32xf32, #tpu.memory_space<vmem>>, %arg8: memref<16x32xf32, #tpu.memory_space<vmem>>) attributes {dimension_semantics = [], scalar_prefetch = 0 : i64, scratch_operands = 1 : i64, tpu.core_type = #tpu.core_type<tc>} {
    %c0 = arith.constant 0 : index
    %c0_0 = arith.constant 0 : index
    %0 = vector.load %arg0[%c0, %c0_0] : memref<16x32xf32, #tpu.memory_space<vmem>>, vector<16x32xf32>
    %c0_1 = arith.constant 0 : index
    %c0_2 = arith.constant 0 : index
    %1 = vector.load %arg6[%c0_1, %c0_2] : memref<7x32xf32, #tpu.memory_space<vmem>>, vector<7x32xf32>
    %2 = vector.extract_strided_slice %1 {offsets = [0, 0], sizes = [1, 32], strides = [1, 1]} : vector<7x32xf32> to vector<1x32xf32>
    %3 = vector.extract_strided_slice %1 {offsets = [1, 0], sizes = [1, 32], strides = [1, 1]} : vector<7x32xf32> to vector<1x32xf32>
    %4 = vector.extract_strided_slice %1 {offsets = [2, 0], sizes = [1, 32], strides = [1, 1]} : vector<7x32xf32> to vector<1x32xf32>
    %5 = vector.extract_strided_slice %1 {offsets = [3, 0], sizes = [1, 32], strides = [1, 1]} : vector<7x32xf32> to vector<1x32xf32>
    %6 = vector.extract_strided_slice %1 {offsets = [4, 0], sizes = [1, 32], strides = [1, 1]} : vector<7x32xf32> to vector<1x32xf32>
    %7 = vector.extract_strided_slice %1 {offsets = [5, 0], sizes = [1, 32], strides = [1, 1]} : vector<7x32xf32> to vector<1x32xf32>
    %8 = vector.extract_strided_slice %1 {offsets = [6, 0], sizes = [1, 32], strides = [1, 1]} : vector<7x32xf32> to vector<1x32xf32>
    %c0_3 = arith.constant 0 : index
    %c0_4 = arith.constant 0 : index
    %9 = vector.load %arg1[%c0_3, %c0_4] : memref<32x96xf32, #tpu.memory_space<vmem>>, vector<32x96xf32>
    %cst = arith.constant dense<0.000000e+00> : vector<16x96xf32>
    %10 = tpu.matmul %0, %9, %cst {dimension_numbers = #tpu.dot_dimension_numbers<[1], [0], [0], [1], [0, 0, 1, 1], [], []>} : vector<16x32xf32>, vector<32x96xf32>, vector<16x96xf32> -> vector<16x96xf32>
    %11 = vector.extract_strided_slice %10 {offsets = [0, 0], sizes = [16, 32], strides = [1, 1]} : vector<16x96xf32> to vector<16x32xf32>
    %12 = vector.broadcast %2 : vector<1x32xf32> to vector<16x32xf32>
    %13 = arith.addf %11, %12 : vector<16x32xf32>
    %14 = vector.extract_strided_slice %10 {offsets = [0, 32], sizes = [16, 32], strides = [1, 1]} : vector<16x96xf32> to vector<16x32xf32>
    %15 = vector.extract_strided_slice %10 {offsets = [0, 64], sizes = [16, 32], strides = [1, 1]} : vector<16x96xf32> to vector<16x32xf32>
    %16 = vector.extract_strided_slice %13 {offsets = [0, 0], sizes = [8, 32], strides = [1, 1]} : vector<16x32xf32> to vector<8x32xf32>
    %17 = vector.extract_strided_slice %14 {offsets = [0, 0], sizes = [8, 32], strides = [1, 1]} : vector<16x32xf32> to vector<8x32xf32>
    %18 = vector.extract_strided_slice %15 {offsets = [0, 0], sizes = [8, 32], strides = [1, 1]} : vector<16x32xf32> to vector<8x32xf32>
    %19 = vector.extract_strided_slice %16 {offsets = [0, 0], sizes = [8, 8], strides = [1, 1]} : vector<8x32xf32> to vector<8x8xf32>
    %20 = vector.extract_strided_slice %17 {offsets = [0, 0], sizes = [8, 8], strides = [1, 1]} : vector<8x32xf32> to vector<8x8xf32>
    %21 = vector.extract_strided_slice %18 {offsets = [0, 0], sizes = [8, 8], strides = [1, 1]} : vector<8x32xf32> to vector<8x8xf32>
    %cst_5 = arith.constant dense<0.000000e+00> : vector<8x8xf32>
    %22 = tpu.matmul %19, %20, %cst_5 {dimension_numbers = #tpu.dot_dimension_numbers<[1], [1], [0], [0], [0, 0, 1, 0], [], []>} : vector<8x8xf32>, vector<8x8xf32>, vector<8x8xf32> -> vector<8x8xf32>
    %cst_6 = arith.constant dense<0xFF800000> : vector<8xf32>
    %23 = vector.multi_reduction <maximumf>, %22, %cst_6 [1] : vector<8x8xf32> to vector<8xf32>
    %24 = vector.shape_cast %23 : vector<8xf32> to vector<8x1xf32>
    %25 = vector.broadcast %24 : vector<8x1xf32> to vector<8x8xf32>
    %26 = arith.subf %22, %25 : vector<8x8xf32>
    %27 = math.exp %26 : vector<8x8xf32>
    %cst_7 = arith.constant dense<0.000000e+00> : vector<8xf32>
    %28 = vector.multi_reduction <add>, %27, %cst_7 [1] : vector<8x8xf32> to vector<8xf32>
    %29 = vector.shape_cast %28 : vector<8xf32> to vector<8x1xf32>
    %30 = vector.broadcast %29 : vector<8x1xf32> to vector<8x8xf32>
    %31 = arith.divf %27, %30 : vector<8x8xf32>
    %cst_8 = arith.constant dense<0.000000e+00> : vector<8x8xf32>
    %32 = tpu.matmul %31, %21, %cst_8 {dimension_numbers = #tpu.dot_dimension_numbers<[1], [0], [0], [1], [0, 0, 1, 1], [], []>} : vector<8x8xf32>, vector<8x8xf32>, vector<8x8xf32> -> vector<8x8xf32>
    %33 = vector.extract_strided_slice %16 {offsets = [0, 8], sizes = [8, 8], strides = [1, 1]} : vector<8x32xf32> to vector<8x8xf32>
    %34 = vector.extract_strided_slice %17 {offsets = [0, 8], sizes = [8, 8], strides = [1, 1]} : vector<8x32xf32> to vector<8x8xf32>
    %35 = vector.extract_strided_slice %18 {offsets = [0, 8], sizes = [8, 8], strides = [1, 1]} : vector<8x32xf32> to vector<8x8xf32>
    %cst_9 = arith.constant dense<0.000000e+00> : vector<8x8xf32>
    %36 = tpu.matmul %33, %34, %cst_9 {dimension_numbers = #tpu.dot_dimension_numbers<[1], [1], [0], [0], [0, 0, 1, 0], [], []>} : vector<8x8xf32>, vector<8x8xf32>, vector<8x8xf32> -> vector<8x8xf32>
    %cst_10 = arith.constant dense<0xFF800000> : vector<8xf32>
    %37 = vector.multi_reduction <maximumf>, %36, %cst_10 [1] : vector<8x8xf32> to vector<8xf32>
    %38 = vector.shape_cast %37 : vector<8xf32> to vector<8x1xf32>
    %39 = vector.broadcast %38 : vector<8x1xf32> to vector<8x8xf32>
    %40 = arith.subf %36, %39 : vector<8x8xf32>
    %41 = math.exp %40 : vector<8x8xf32>
    %cst_11 = arith.constant dense<0.000000e+00> : vector<8xf32>
    %42 = vector.multi_reduction <add>, %41, %cst_11 [1] : vector<8x8xf32> to vector<8xf32>
    %43 = vector.shape_cast %42 : vector<8xf32> to vector<8x1xf32>
    %44 = vector.broadcast %43 : vector<8x1xf32> to vector<8x8xf32>
    %45 = arith.divf %41, %44 : vector<8x8xf32>
    %cst_12 = arith.constant dense<0.000000e+00> : vector<8x8xf32>
    %46 = tpu.matmul %45, %35, %cst_12 {dimension_numbers = #tpu.dot_dimension_numbers<[1], [0], [0], [1], [0, 0, 1, 1], [], []>} : vector<8x8xf32>, vector<8x8xf32>, vector<8x8xf32> -> vector<8x8xf32>
    %47 = vector.extract_strided_slice %16 {offsets = [0, 16], sizes = [8, 8], strides = [1, 1]} : vector<8x32xf32> to vector<8x8xf32>
    %48 = vector.extract_strided_slice %17 {offsets = [0, 16], sizes = [8, 8], strides = [1, 1]} : vector<8x32xf32> to vector<8x8xf32>
    %49 = vector.extract_strided_slice %18 {offsets = [0, 16], sizes = [8, 8], strides = [1, 1]} : vector<8x32xf32> to vector<8x8xf32>
    %cst_13 = arith.constant dense<0.000000e+00> : vector<8x8xf32>
    %50 = tpu.matmul %47, %48, %cst_13 {dimension_numbers = #tpu.dot_dimension_numbers<[1], [1], [0], [0], [0, 0, 1, 0], [], []>} : vector<8x8xf32>, vector<8x8xf32>, vector<8x8xf32> -> vector<8x8xf32>
    %cst_14 = arith.constant dense<0xFF800000> : vector<8xf32>
    %51 = vector.multi_reduction <maximumf>, %50, %cst_14 [1] : vector<8x8xf32> to vector<8xf32>
    %52 = vector.shape_cast %51 : vector<8xf32> to vector<8x1xf32>
    %53 = vector.broadcast %52 : vector<8x1xf32> to vector<8x8xf32>
    %54 = arith.subf %50, %53 : vector<8x8xf32>
    %55 = math.exp %54 : vector<8x8xf32>
    %cst_15 = arith.constant dense<0.000000e+00> : vector<8xf32>
    %56 = vector.multi_reduction <add>, %55, %cst_15 [1] : vector<8x8xf32> to vector<8xf32>
    %57 = vector.shape_cast %56 : vector<8xf32> to vector<8x1xf32>
    %58 = vector.broadcast %57 : vector<8x1xf32> to vector<8x8xf32>
    %59 = arith.divf %55, %58 : vector<8x8xf32>
    %cst_16 = arith.constant dense<0.000000e+00> : vector<8x8xf32>
    %60 = tpu.matmul %59, %49, %cst_16 {dimension_numbers = #tpu.dot_dimension_numbers<[1], [0], [0], [1], [0, 0, 1, 1], [], []>} : vector<8x8xf32>, vector<8x8xf32>, vector<8x8xf32> -> vector<8x8xf32>
    %61 = vector.extract_strided_slice %16 {offsets = [0, 24], sizes = [8, 8], strides = [1, 1]} : vector<8x32xf32> to vector<8x8xf32>
    %62 = vector.extract_strided_slice %17 {offsets = [0, 24], sizes = [8, 8], strides = [1, 1]} : vector<8x32xf32> to vector<8x8xf32>
    %63 = vector.extract_strided_slice %18 {offsets = [0, 24], sizes = [8, 8], strides = [1, 1]} : vector<8x32xf32> to vector<8x8xf32>
    %cst_17 = arith.constant dense<0.000000e+00> : vector<8x8xf32>
    %64 = tpu.matmul %61, %62, %cst_17 {dimension_numbers = #tpu.dot_dimension_numbers<[1], [1], [0], [0], [0, 0, 1, 0], [], []>} : vector<8x8xf32>, vector<8x8xf32>, vector<8x8xf32> -> vector<8x8xf32>
    %cst_18 = arith.constant dense<0xFF800000> : vector<8xf32>
    %65 = vector.multi_reduction <maximumf>, %64, %cst_18 [1] : vector<8x8xf32> to vector<8xf32>
    %66 = vector.shape_cast %65 : vector<8xf32> to vector<8x1xf32>
    %67 = vector.broadcast %66 : vector<8x1xf32> to vector<8x8xf32>
    %68 = arith.subf %64, %67 : vector<8x8xf32>
    %69 = math.exp %68 : vector<8x8xf32>
    %cst_19 = arith.constant dense<0.000000e+00> : vector<8xf32>
    %70 = vector.multi_reduction <add>, %69, %cst_19 [1] : vector<8x8xf32> to vector<8xf32>
    %71 = vector.shape_cast %70 : vector<8xf32> to vector<8x1xf32>
    %72 = vector.broadcast %71 : vector<8x1xf32> to vector<8x8xf32>
    %73 = arith.divf %69, %72 : vector<8x8xf32>
    %cst_20 = arith.constant dense<0.000000e+00> : vector<8x8xf32>
    %74 = tpu.matmul %73, %63, %cst_20 {dimension_numbers = #tpu.dot_dimension_numbers<[1], [0], [0], [1], [0, 0, 1, 1], [], []>} : vector<8x8xf32>, vector<8x8xf32>, vector<8x8xf32> -> vector<8x8xf32>
    %75 = tpu.concatenate %32, %46, %60, %74 in 1 : vector<8x8xf32>, vector<8x8xf32>, vector<8x8xf32>, vector<8x8xf32> -> vector<8x32xf32>
    %c0_21 = arith.constant 0 : index
    %c0_22 = arith.constant 0 : index
    %76 = vector.load %arg2[%c0_21, %c0_22] : memref<32x32xf32, #tpu.memory_space<vmem>>, vector<32x32xf32>
    %cst_23 = arith.constant dense<0.000000e+00> : vector<8x32xf32>
    %77 = tpu.matmul %75, %76, %cst_23 {dimension_numbers = #tpu.dot_dimension_numbers<[1], [0], [0], [1], [0, 0, 1, 1], [], []>} : vector<8x32xf32>, vector<32x32xf32>, vector<8x32xf32> -> vector<8x32xf32>
    %c0_24 = arith.constant 0 : index
    %c0_25 = arith.constant 0 : index
    %78 = vector.load %arg8[%c0_24, %c0_25] : memref<16x32xf32, #tpu.memory_space<vmem>>, vector<8x32xf32>
    tpu.vector_store %arg8[%c0_24, %c0_25], %77 {strides = array<i32>} : memref<16x32xf32, #tpu.memory_space<vmem>>, vector<8x32xf32>,
    %79 = vector.extract_strided_slice %13 {offsets = [8, 0], sizes = [8, 32], strides = [1, 1]} : vector<16x32xf32> to vector<8x32xf32>
    %80 = vector.extract_strided_slice %14 {offsets = [8, 0], sizes = [8, 32], strides = [1, 1]} : vector<16x32xf32> to vector<8x32xf32>
    %81 = vector.extract_strided_slice %15 {offsets = [8, 0], sizes = [8, 32], strides = [1, 1]} : vector<16x32xf32> to vector<8x32xf32>
    %82 = vector.extract_strided_slice %79 {offsets = [0, 0], sizes = [8, 8], strides = [1, 1]} : vector<8x32xf32> to vector<8x8xf32>
    %83 = vector.extract_strided_slice %80 {offsets = [0, 0], sizes = [8, 8], strides = [1, 1]} : vector<8x32xf32> to vector<8x8xf32>
    %84 = vector.extract_strided_slice %81 {offsets = [0, 0], sizes = [8, 8], strides = [1, 1]} : vector<8x32xf32> to vector<8x8xf32>
    %cst_26 = arith.constant dense<0.000000e+00> : vector<8x8xf32>
    %85 = tpu.matmul %82, %83, %cst_26 {dimension_numbers = #tpu.dot_dimension_numbers<[1], [1], [0], [0], [0, 0, 1, 0], [], []>} : vector<8x8xf32>, vector<8x8xf32>, vector<8x8xf32> -> vector<8x8xf32>
    %cst_27 = arith.constant dense<0xFF800000> : vector<8xf32>
    %86 = vector.multi_reduction <maximumf>, %85, %cst_27 [1] : vector<8x8xf32> to vector<8xf32>
    %87 = vector.shape_cast %86 : vector<8xf32> to vector<8x1xf32>
    %88 = vector.broadcast %87 : vector<8x1xf32> to vector<8x8xf32>
    %89 = arith.subf %85, %88 : vector<8x8xf32>
    %90 = math.exp %89 : vector<8x8xf32>
    %cst_28 = arith.constant dense<0.000000e+00> : vector<8xf32>
    %91 = vector.multi_reduction <add>, %90, %cst_28 [1] : vector<8x8xf32> to vector<8xf32>
    %92 = vector.shape_cast %91 : vector<8xf32> to vector<8x1xf32>
    %93 = vector.broadcast %92 : vector<8x1xf32> to vector<8x8xf32>
    %94 = arith.divf %90, %93 : vector<8x8xf32>
    %cst_29 = arith.constant dense<0.000000e+00> : vector<8x8xf32>
    %95 = tpu.matmul %94, %84, %cst_29 {dimension_numbers = #tpu.dot_dimension_numbers<[1], [0], [0], [1], [0, 0, 1, 1], [], []>} : vector<8x8xf32>, vector<8x8xf32>, vector<8x8xf32> -> vector<8x8xf32>
    %96 = vector.extract_strided_slice %79 {offsets = [0, 8], sizes = [8, 8], strides = [1, 1]} : vector<8x32xf32> to vector<8x8xf32>
    %97 = vector.extract_strided_slice %80 {offsets = [0, 8], sizes = [8, 8], strides = [1, 1]} : vector<8x32xf32> to vector<8x8xf32>
    %98 = vector.extract_strided_slice %81 {offsets = [0, 8], sizes = [8, 8], strides = [1, 1]} : vector<8x32xf32> to vector<8x8xf32>
    %cst_30 = arith.constant dense<0.000000e+00> : vector<8x8xf32>
    %99 = tpu.matmul %96, %97, %cst_30 {dimension_numbers = #tpu.dot_dimension_numbers<[1], [1], [0], [0], [0, 0, 1, 0], [], []>} : vector<8x8xf32>, vector<8x8xf32>, vector<8x8xf32> -> vector<8x8xf32>
    %cst_31 = arith.constant dense<0xFF800000> : vector<8xf32>
    %100 = vector.multi_reduction <maximumf>, %99, %cst_31 [1] : vector<8x8xf32> to vector<8xf32>
    %101 = vector.shape_cast %100 : vector<8xf32> to vector<8x1xf32>
    %102 = vector.broadcast %101 : vector<8x1xf32> to vector<8x8xf32>
    %103 = arith.subf %99, %102 : vector<8x8xf32>
    %104 = math.exp %103 : vector<8x8xf32>
    %cst_32 = arith.constant dense<0.000000e+00> : vector<8xf32>
    %105 = vector.multi_reduction <add>, %104, %cst_32 [1] : vector<8x8xf32> to vector<8xf32>
    %106 = vector.shape_cast %105 : vector<8xf32> to vector<8x1xf32>
    %107 = vector.broadcast %106 : vector<8x1xf32> to vector<8x8xf32>
    %108 = arith.divf %104, %107 : vector<8x8xf32>
    %cst_33 = arith.constant dense<0.000000e+00> : vector<8x8xf32>
    %109 = tpu.matmul %108, %98, %cst_33 {dimension_numbers = #tpu.dot_dimension_numbers<[1], [0], [0], [1], [0, 0, 1, 1], [], []>} : vector<8x8xf32>, vector<8x8xf32>, vector<8x8xf32> -> vector<8x8xf32>
    %110 = vector.extract_strided_slice %79 {offsets = [0, 16], sizes = [8, 8], strides = [1, 1]} : vector<8x32xf32> to vector<8x8xf32>
    %111 = vector.extract_strided_slice %80 {offsets = [0, 16], sizes = [8, 8], strides = [1, 1]} : vector<8x32xf32> to vector<8x8xf32>
    %112 = vector.extract_strided_slice %81 {offsets = [0, 16], sizes = [8, 8], strides = [1, 1]} : vector<8x32xf32> to vector<8x8xf32>
    %cst_34 = arith.constant dense<0.000000e+00> : vector<8x8xf32>
    %113 = tpu.matmul %110, %111, %cst_34 {dimension_numbers = #tpu.dot_dimension_numbers<[1], [1], [0], [0], [0, 0, 1, 0], [], []>} : vector<8x8xf32>, vector<8x8xf32>, vector<8x8xf32> -> vector<8x8xf32>
    %cst_35 = arith.constant dense<0xFF800000> : vector<8xf32>
    %114 = vector.multi_reduction <maximumf>, %113, %cst_35 [1] : vector<8x8xf32> to vector<8xf32>
    %115 = vector.shape_cast %114 : vector<8xf32> to vector<8x1xf32>
    %116 = vector.broadcast %115 : vector<8x1xf32> to vector<8x8xf32>
    %117 = arith.subf %113, %116 : vector<8x8xf32>
    %118 = math.exp %117 : vector<8x8xf32>
    %cst_36 = arith.constant dense<0.000000e+00> : vector<8xf32>
    %119 = vector.multi_reduction <add>, %118, %cst_36 [1] : vector<8x8xf32> to vector<8xf32>
    %120 = vector.shape_cast %119 : vector<8xf32> to vector<8x1xf32>
    %121 = vector.broadcast %120 : vector<8x1xf32> to vector<8x8xf32>
    %122 = arith.divf %118, %121 : vector<8x8xf32>
    %cst_37 = arith.constant dense<0.000000e+00> : vector<8x8xf32>
    %123 = tpu.matmul %122, %112, %cst_37 {dimension_numbers = #tpu.dot_dimension_numbers<[1], [0], [0], [1], [0, 0, 1, 1], [], []>} : vector<8x8xf32>, vector<8x8xf32>, vector<8x8xf32> -> vector<8x8xf32>
    %124 = vector.extract_strided_slice %79 {offsets = [0, 24], sizes = [8, 8], strides = [1, 1]} : vector<8x32xf32> to vector<8x8xf32>
    %125 = vector.extract_strided_slice %80 {offsets = [0, 24], sizes = [8, 8], strides = [1, 1]} : vector<8x32xf32> to vector<8x8xf32>
    %126 = vector.extract_strided_slice %81 {offsets = [0, 24], sizes = [8, 8], strides = [1, 1]} : vector<8x32xf32> to vector<8x8xf32>
    %cst_38 = arith.constant dense<0.000000e+00> : vector<8x8xf32>
    %127 = tpu.matmul %124, %125, %cst_38 {dimension_numbers = #tpu.dot_dimension_numbers<[1], [1], [0], [0], [0, 0, 1, 0], [], []>} : vector<8x8xf32>, vector<8x8xf32>, vector<8x8xf32> -> vector<8x8xf32>
    %cst_39 = arith.constant dense<0xFF800000> : vector<8xf32>
    %128 = vector.multi_reduction <maximumf>, %127, %cst_39 [1] : vector<8x8xf32> to vector<8xf32>
    %129 = vector.shape_cast %128 : vector<8xf32> to vector<8x1xf32>
    %130 = vector.broadcast %129 : vector<8x1xf32> to vector<8x8xf32>
    %131 = arith.subf %127, %130 : vector<8x8xf32>
    %132 = math.exp %131 : vector<8x8xf32>
    %cst_40 = arith.constant dense<0.000000e+00> : vector<8xf32>
    %133 = vector.multi_reduction <add>, %132, %cst_40 [1] : vector<8x8xf32> to vector<8xf32>
    %134 = vector.shape_cast %133 : vector<8xf32> to vector<8x1xf32>
    %135 = vector.broadcast %134 : vector<8x1xf32> to vector<8x8xf32>
    %136 = arith.divf %132, %135 : vector<8x8xf32>
    %cst_41 = arith.constant dense<0.000000e+00> : vector<8x8xf32>
    %137 = tpu.matmul %136, %126, %cst_41 {dimension_numbers = #tpu.dot_dimension_numbers<[1], [0], [0], [1], [0, 0, 1, 1], [], []>} : vector<8x8xf32>, vector<8x8xf32>, vector<8x8xf32> -> vector<8x8xf32>
    %138 = tpu.concatenate %95, %109, %123, %137 in 1 : vector<8x8xf32>, vector<8x8xf32>, vector<8x8xf32>, vector<8x8xf32> -> vector<8x32xf32>
    %c0_42 = arith.constant 0 : index
    %c0_43 = arith.constant 0 : index
    %139 = vector.load %arg2[%c0_42, %c0_43] : memref<32x32xf32, #tpu.memory_space<vmem>>, vector<32x32xf32>
    %cst_44 = arith.constant dense<0.000000e+00> : vector<8x32xf32>
    %140 = tpu.matmul %138, %139, %cst_44 {dimension_numbers = #tpu.dot_dimension_numbers<[1], [0], [0], [1], [0, 0, 1, 1], [], []>} : vector<8x32xf32>, vector<32x32xf32>, vector<8x32xf32> -> vector<8x32xf32>
    %c8 = arith.constant 8 : index
    %c0_45 = arith.constant 0 : index
    %141 = vector.load %arg8[%c8, %c0_45] : memref<16x32xf32, #tpu.memory_space<vmem>>, vector<8x32xf32>
    tpu.vector_store %arg8[%c8, %c0_45], %140 {strides = array<i32>} : memref<16x32xf32, #tpu.memory_space<vmem>>, vector<8x32xf32>,
    %c0_46 = arith.constant 0 : index
    %c0_47 = arith.constant 0 : index
    %142 = vector.load %arg8[%c0_46, %c0_47] : memref<16x32xf32, #tpu.memory_space<vmem>>, vector<16x32xf32>
    %143 = vector.broadcast %3 : vector<1x32xf32> to vector<16x32xf32>
    %144 = arith.addf %142, %143 : vector<16x32xf32>
    %145 = arith.addf %0, %144 : vector<16x32xf32>
    %cst_48 = arith.constant dense<0.000000e+00> : vector<16xf32>
    %146 = vector.multi_reduction <add>, %145, %cst_48 [1] : vector<16x32xf32> to vector<16xf32>
    %147 = vector.shape_cast %146 : vector<16xf32> to vector<16x1xf32>
    %cst_49 = arith.constant 3.200000e+01 : f32
    %148 = vector.broadcast %cst_49 : f32 to vector<16x1xf32>
    %149 = arith.divf %147, %148 : vector<16x1xf32>
    %150 = vector.broadcast %149 : vector<16x1xf32> to vector<16x32xf32>
    %151 = arith.subf %145, %150 : vector<16x32xf32>
    %152 = arith.mulf %151, %151 : vector<16x32xf32>
    %cst_50 = arith.constant dense<0.000000e+00> : vector<16xf32>
    %153 = vector.multi_reduction <add>, %152, %cst_50 [1] : vector<16x32xf32> to vector<16xf32>
    %154 = vector.shape_cast %153 : vector<16xf32> to vector<16x1xf32>
    %cst_51 = arith.constant 3.200000e+01 : f32
    %155 = vector.broadcast %cst_51 : f32 to vector<16x1xf32>
    %156 = arith.divf %154, %155 : vector<16x1xf32>
    %cst_52 = arith.constant 9.99999974E-6 : f32
    %157 = vector.broadcast %cst_52 : f32 to vector<16x1xf32>
    %158 = arith.addf %156, %157 : vector<16x1xf32>
    %159 = math.rsqrt %158 : vector<16x1xf32>
    %160 = vector.broadcast %149 : vector<16x1xf32> to vector<16x32xf32>
    %161 = arith.subf %145, %160 : vector<16x32xf32>
    %162 = vector.broadcast %159 : vector<16x1xf32> to vector<16x32xf32>
    %163 = arith.mulf %161, %162 : vector<16x32xf32>
    %164 = vector.broadcast %4 : vector<1x32xf32> to vector<16x32xf32>
    %165 = arith.mulf %163, %164 : vector<16x32xf32>
    %166 = vector.broadcast %5 : vector<1x32xf32> to vector<16x32xf32>
    %167 = arith.addf %165, %166 : vector<16x32xf32>
    %c0_53 = arith.constant 0 : index
    %c0_54 = arith.constant 0 : index
    %168 = vector.load %arg3[%c0_53, %c0_54] : memref<32x128xf32, #tpu.memory_space<vmem>>, vector<32x128xf32>
    %cst_55 = arith.constant dense<0.000000e+00> : vector<16x128xf32>
    %169 = tpu.matmul %167, %168, %cst_55 {dimension_numbers = #tpu.dot_dimension_numbers<[1], [0], [0], [1], [0, 0, 1, 1], [], []>} : vector<16x32xf32>, vector<32x128xf32>, vector<16x128xf32> -> vector<16x128xf32>
    %c0_56 = arith.constant 0 : index
    %c0_57 = arith.constant 0 : index
    %170 = vector.load %arg4[%c0_56, %c0_57] : memref<1x128xf32, #tpu.memory_space<vmem>>, vector<1x128xf32>
    %171 = vector.broadcast %170 : vector<1x128xf32> to vector<16x128xf32>
    %172 = arith.addf %169, %171 : vector<16x128xf32>
    %cst_58 = arith.constant 0.000000e+00 : f32
    %173 = vector.broadcast %cst_58 : f32 to vector<16x128xf32>
    %174 = arith.maximumf %172, %173 : vector<16x128xf32>
    %c0_59 = arith.constant 0 : index
    %c0_60 = arith.constant 0 : index
    %175 = vector.load %arg5[%c0_59, %c0_60] : memref<128x32xf32, #tpu.memory_space<vmem>>, vector<128x32xf32>
    %cst_61 = arith.constant dense<0.000000e+00> : vector<16x32xf32>
    %176 = tpu.matmul %174, %175, %cst_61 {dimension_numbers = #tpu.dot_dimension_numbers<[1], [0], [0], [1], [0, 0, 1, 1], [], []>} : vector<16x128xf32>, vector<128x32xf32>, vector<16x32xf32> -> vector<16x32xf32>
    %177 = vector.broadcast %6 : vector<1x32xf32> to vector<16x32xf32>
    %178 = arith.addf %176, %177 : vector<16x32xf32>
    %179 = arith.addf %167, %178 : vector<16x32xf32>
    %cst_62 = arith.constant dense<0.000000e+00> : vector<16xf32>
    %180 = vector.multi_reduction <add>, %179, %cst_62 [1] : vector<16x32xf32> to vector<16xf32>
    %181 = vector.shape_cast %180 : vector<16xf32> to vector<16x1xf32>
    %cst_63 = arith.constant 3.200000e+01 : f32
    %182 = vector.broadcast %cst_63 : f32 to vector<16x1xf32>
    %183 = arith.divf %181, %182 : vector<16x1xf32>
    %184 = vector.broadcast %183 : vector<16x1xf32> to vector<16x32xf32>
    %185 = arith.subf %179, %184 : vector<16x32xf32>
    %186 = arith.mulf %185, %185 : vector<16x32xf32>
    %cst_64 = arith.constant dense<0.000000e+00> : vector<16xf32>
    %187 = vector.multi_reduction <add>, %186, %cst_64 [1] : vector<16x32xf32> to vector<16xf32>
    %188 = vector.shape_cast %187 : vector<16xf32> to vector<16x1xf32>
    %cst_65 = arith.constant 3.200000e+01 : f32
    %189 = vector.broadcast %cst_65 : f32 to vector<16x1xf32>
    %190 = arith.divf %188, %189 : vector<16x1xf32>
    %cst_66 = arith.constant 9.99999974E-6 : f32
    %191 = vector.broadcast %cst_66 : f32 to vector<16x1xf32>
    %192 = arith.addf %190, %191 : vector<16x1xf32>
    %193 = math.rsqrt %192 : vector<16x1xf32>
    %194 = vector.broadcast %183 : vector<16x1xf32> to vector<16x32xf32>
    %195 = arith.subf %179, %194 : vector<16x32xf32>
    %196 = vector.broadcast %193 : vector<16x1xf32> to vector<16x32xf32>
    %197 = arith.mulf %195, %196 : vector<16x32xf32>
    %198 = vector.broadcast %7 : vector<1x32xf32> to vector<16x32xf32>
    %199 = arith.mulf %197, %198 : vector<16x32xf32>
    %200 = vector.broadcast %8 : vector<1x32xf32> to vector<16x32xf32>
    %201 = arith.addf %199, %200 : vector<16x32xf32>
    %c0_67 = arith.constant 0 : index
    %c0_68 = arith.constant 0 : index
    %202 = vector.load %arg7[%c0_67, %c0_68] : memref<16x32xf32, #tpu.memory_space<vmem>>, vector<16x32xf32>
    tpu.vector_store %arg7[%c0_67, %c0_68], %201 {strides = array<i32>} : memref<16x32xf32, #tpu.memory_space<vmem>>, vector<16x32xf32>,
    return
  }
}

</mosaic_0001>

<bundles_post_ra>
// kernel: tpu_custom_call.1
= control target key start
LH: loop header
LB: loop body
LE: loop exit
PB: predicated region body
PF: predicated region fallthrough
CT: control target
= control target key end

     0   :  { %vm34_vm0 = vcmask 261120   ;;  %s2714_s0 = inlined_call_operand.vmem [shape: f32[16,32], index: 0, kind: input, shape index: {}]   ;;  %s2715_s1 = inlined_call_operand.vmem [shape: f32[32,96], index: 1, kind: input, shape index: {}]   ;;  %s2716_s2 = inlined_call_operand.vmem [shape: f32[32,32], index: 2, kind: input, shape index: {}]   ;;  %s2717_s3 = inlined_call_operand.vmem [shape: f32[32,128], index: 3, kind: input, shape index: {}]   ;;  %s2718_s4 = inlined_call_operand.vmem [shape: f32[1,128], index: 4, kind: input, shape index: {}]   ;;  %s2719_s5 = inlined_call_operand.vmem [shape: f32[128,32], index: 5, kind: input, shape index: {}]   ;;  %s2720_s6 = inlined_call_operand.vmem [shape: f32[7,32], index: 6, kind: input, shape index: {}]   ;;  %s2721_s7 = inlined_call_operand.hbm [shape: f32[16,32], index: 7, kind: output, shape index: {}]  }
   0x1   :  { %v30_v0 = vld [vmem:[%s2715_s1] sm:$0xff]  ;;  %v31_v1 = vld [vmem:[%s2715_s1 + $0x8] sm:$0xff]  ;;  %v32_v2 = vld [vmem:[%s2715_s1 + $0x10] sm:$0xff] }
   0x2   :  { %v2189_v3 = vpack.c.bf16 %v31_v1, %v30_v0  ;;  %v33_v4 = vld [vmem:[%s2715_s1 + $0x18] sm:$0xff]  ;;  %v2406_v5 = vld [vmem:[%s2714_s0] sm:$0xff] }
   0x3   :  { %v2193_v6 = vpack.c.bf16 %v33_v4, %v32_v2  ;;  %2038 = vmatprep.mubr.msk.f32.mxu1 %vm34_vm0, %v2406_v5 }
   0x4   :  { %12 = vsyncpa [#allocation4], 0  ;;  %2190 = vmatprep.subr.bf16.mxu1 %v2189_v3  ;;  %v2413_v7 = vld [vmem:[%s2714_s0 + $0x8] sm:$0xff]  ;;  %v2332_v8 = vmov 0.0   ;;  %v116_v9 = vlaneseq  ;;  %vm2333_vm1 = vmmov 0   ;;  %s2334_s13 = smov 96  }
   0x5   :  { %2192 = vmatpush3.bf16.msra.mxu1 %v2189_v3  ;;  %2051 = vmatprep.subr.mxu0 %v2332_v8  ;;  %v2429_v12 = vld [vmem:[%s2720_s6] sm:$0x7f]  ;;  %s2335_s14 = smov 120   ;;  %s2336_s6 = smov 88   ;;  %vm125_vm2 = vcmask 64512   ;;  %vm796_vm3 = vcmask 130048  }
   0x6   :  { %2194 = vmatprep.subr.bf16.mxu1 %v2193_v6  ;;  %v2419_v10 = vshrl.u32 %v116_v9, 7  ;;  %2053 = vmatprep.mubr.msk.f32.mxu0 %vm2333_vm1, %v2332_v8  ;;  %s2337_s15 = smov 80   ;;  %s2338_s16 = smov 112   ;;  %vm798_vm4 = vcmask 195584  }
   0x7   :  { %s2339_s17 = smov 72   ;;  %s2340_s18 = smov 104  }
   0x8   :  { %v118_v11 = vsub.s32 0, %v2419_v10  ;;  %s2341_s19 = smov 56   ;;  %s2342_s20 = smov 64  }
   0x9   :  { %2196 = vmatpush3.bf16.msra.mxu1 %v2193_v6  ;;  %s2343_s21 = smov 48   ;;  %s2344_s22 = smov 40  }
   0xa   :  { %2041 = vmatprep.subr.mxu1 %v2332_v8  ;;  %v119_v13 = vrot.slane %v2429_v12, %v118_v11  ;;  %s2346_s8 = smov 8   ;;  %s2347_s9 = smov 16  }
   0xc   :  { %2039 = vmatmul.mubr.msk.f32.vlgmr.msra.gmra.mrb[0].mxu1 %vm34_vm0, %v2413_v7 }
   0xd   :  { %2043 = vmatprep.mubr.msk.f32.mxu1 %vm2333_vm1, %v2332_v8 }
  0xdf   :  { %v2432_v14 = vpop.f32.mrb[0].mxu1 }
  0xe0   :  { %v2434_v15 = vpop.f32.mrb[1].mxu1  ;;  %v2437_v16 = vadd.f32 %v2432_v14, %v119_v13 }
  0xe1   :  { %123 = vrot.lane.b32.xlu0 %v2434_v15, %s2334_s13  ;;  %v120_v17 = vadd.f32 %v119_v13, %v2434_v15 }
  0xe3   :  { %288 = vrot.lane.b32.xlu1 %v120_v17, %s2335_s14 }
  0xe5   :  { %290 = vrot.lane.b32.xlu0 %v2434_v15, %s2336_s6 }
  0xe7   :  { %455 = vrot.lane.b32.xlu1 %v2434_v15, %s2337_s15 }
  0xe9   :  { %453 = vrot.lane.b32.xlu0 %v120_v17, %s2338_s16 }
  0xeb   :  { %620 = vrot.lane.b32.xlu1 %v2434_v15, %s2339_s17 }
  0xed   :  { %618 = vrot.lane.b32.xlu0 %v120_v17, %s2340_s18 }
 0x153   :  { %v124_v18 = vpop.permute.xlu0 %123 }
 0x154   :  { %2042 = vmatpush3.xpose.msk.msra.mxu1 %vm125_vm2, %v124_v18  ;;  %v802_v18 = vld [vmem:[%s2716_s2 + $0x10] sm:$0xff] }
 0x155   :  { %v289_v19 = vpop.permute.xlu1 %288  ;;  %2046 = vmatprep.subr.mxu1 %v2332_v8 }
 0x157   :  { %v291_v20 = vpop.permute.xlu0 %290  ;;  %2044 = vmatmul.mubr.msk.f32.vlgmr.msra.gmra.mrb[2].mxu1 %vm125_vm2, %v120_v17  ;;  %v801_v17 = vld [vmem:[%s2716_s2 + $0x8] sm:$0xff] }
 0x158   :  { %2052 = vmatpush3.xpose.msk.msra.mxu0 %vm125_vm2, %v291_v20  ;;  %2048 = vmatprep.mubr.msk.f32.mxu1 %vm2333_vm1, %v2332_v8 }
 0x159   :  { %v456_v21 = vpop.permute.xlu1 %455  ;;  %2061 = vmatprep.subr.mxu0 %v2332_v8 }
 0x15b   :  { %2054 = vmatmul.mubr.msk.f32.vlgmr.msra.gmra.mrb[0].mxu0 %vm125_vm2, %v289_v19  ;;  %v454_v22 = vpop.permute.xlu0 %453  ;;  %v2345_v19 = vmov 0.0|0.0  }
 0x15c   :  { %2062 = vmatpush3.xpose.msk.msra.mxu0 %vm125_vm2, %v456_v21  ;;  %2063 = vmatprep.mubr.msk.f32.mxu0 %vm2333_vm1, %v2332_v8  ;;  %v803_v21 = vld [vmem:[%s2716_s2 + $0x18] sm:$0xff] }
 0x15d   :  { %2071 = vmatprep.subr.mxu0 %v2332_v8  ;;  %v621_v23 = vpop.permute.xlu1 %620 }
 0x15f   :  { %2064 = vmatmul.mubr.msk.f32.vlgmr.msra.gmra.mrb[2].mxu0 %vm125_vm2, %v454_v22  ;;  %v619_v24 = vpop.permute.xlu0 %618  ;;  %v2201_v22 = vpack.c.bf16 %v803_v21, %v802_v18 }
 0x160   :  { %2072 = vmatpush3.xpose.msk.msra.mxu0 %vm125_vm2, %v621_v23  ;;  %2073 = vmatprep.mubr.msk.f32.mxu0 %vm2333_vm1, %v2332_v8 }
 0x161   :  { %2102 = vmatprep.subr.mxu0 %v2332_v8 }
 0x163   :  { %2074 = vmatmul.mubr.msk.f32.vlgmr.msra.gmra.mrb[4].mxu0 %vm125_vm2, %v619_v24 }
 0x164   :  { %2104 = vmatprep.mubr.msk.f32.mxu0 %vm2333_vm1, %v2332_v8 }
 0x22a   :  { %v197_v25 = vpop.f32.mrb[2].mxu1 }
 0x22b   :  { %v2045_v26 = vpop.f32.mrb[3].mxu1  ;;  %v201_v27 = vsel %vm125_vm2, %v197_v25, -inf }
 0x22c   :  { %202 = vmax.xlane.f32.xlu1 %v201_v27 }
 0x22e   :  { %v362_v28 = vpop.f32.mrb[0].mxu0 }
 0x22f   :  { %v2055_v29 = vpop.f32.mrb[1].mxu0  ;;  %v366_v30 = vsel %vm125_vm2, %v362_v28, -inf }
 0x230   :  { %367 = vmax.xlane.f32.xlu0 %v366_v30 }
 0x232   :  { %v527_v31 = vpop.f32.mrb[2].mxu0 }
 0x233   :  { %v2065_v32 = vpop.f32.mrb[3].mxu0  ;;  %v531_v33 = vsel %vm125_vm2, %v527_v31, -inf }
 0x234   :  { %532 = vmax.xlane.f32.xlu0 %v531_v33 }
 0x236   :  { %v692_v34 = vpop.f32.mrb[4].mxu0 }
 0x237   :  { %v2075_v35 = vpop.f32.mrb[5].mxu0  ;;  %v696_v36 = vsel %vm125_vm2, %v692_v34, -inf }
 0x238   :  { %697 = vmax.xlane.f32.xlu1 %v696_v36 }
 0x249   :  { %377 = vrot.lane.b32.xlu1 %v2434_v15, %s2341_s19 }
 0x2b9   :  { %v203_v37 = vpop.xlane.xlu1 %202 }
 0x2ba   :  { %v204_v38 = vsub.f32 %v197_v25, %v203_v37 }
 0x2bc   :  { %v205_v39 = vmul.f32 1.442695, %v204_v38 }
 0x2bd   :  { %v368_v40 = vpop.xlane.xlu0 %367 }
 0x2be   :  { %2268 = vpow2.f32 %v205_v39  ;;  %v369_v41 = vsub.f32 %v362_v28, %v368_v40 }
 0x2c0   :  { %v370_v42 = vmul.f32 1.442695, %v369_v41 }
 0x2c1   :  { %v533_v52 = vpop.xlane.xlu0 %532 }
 0x2c2   :  { %2270 = vpow2.f32 %v370_v42  ;;  %v534_v53 = vsub.f32 %v527_v31, %v533_v52 }
 0x2c4   :  { %v535_v54 = vmul.f32 1.442695, %v534_v53 }
 0x2c5   :  { %v698_v43 = vpop.xlane.xlu1 %697 }
 0x2c6   :  { %v699_v44 = vsub.f32 %v692_v34, %v698_v43 }
 0x2c8   :  { %v2269_v45 = vpop.eup %2268  ;;  %v700_v46 = vmul.f32 1.442695, %v699_v44 }
 0x2c9   :  { %v207_v47 = vsel %vm125_vm2, %v2269_v45, 0.0  ;;  %v378_v57 = vpop.permute.xlu1 %377 }
 0x2ca   :  { %2272 = vpow2.f32 %v700_v46  ;;  %208 = vadd.xlane.f32.xlu0 %v207_v47 }
 0x2cb   :  { %2274 = vpow2.f32 %v535_v54 }
 0x2cc   :  { %v2271_v48 = vpop.eup %2270 }
 0x2cd   :  { %v372_v49 = vsel %vm125_vm2, %v2271_v48, 0.0 }
 0x2ce   :  { %373 = vadd.xlane.f32.xlu1 %v372_v49 }
 0x2d4   :  { %v2273_v50 = vpop.eup %2272 }
 0x2d5   :  { %v702_v51 = vsel %vm125_vm2, %v2273_v50, 0.0  ;;  %v2275_v55 = vpop.eup %2274 }
 0x2d6   :  { %703 = vadd.xlane.f32.xlu1 %v702_v51  ;;  %v537_v56 = vsel %vm125_vm2, %v2275_v55, 0.0 }
 0x2e0   :  { %212 = vrot.lane.b32.xlu0 %v2434_v15, %s2342_s20 }
 0x2e7   :  { %542 = vrot.lane.b32.xlu1 %v2434_v15, %s2343_s21 }
 0x2ff   :  { %538 = vadd.xlane.f32.xlu0 %v537_v56 }
 0x315   :  { %707 = vrot.lane.b32.xlu0 %v2434_v15, %s2344_s22  ;;  %v800_v15 = vld [vmem:[%s2716_s2] sm:$0xff]  ;;  %s2348_s2 = smov 24  }
 0x316   :  { %v2198_v20 = vpack.c.bf16 %v801_v17, %v800_v15 }
 0x357   :  { %v209_v58 = vpop.xlane.xlu0 %208 }
 0x358   :  { %2276 = vrcp.f32 %v209_v58 }
 0x35b   :  { %v213_v59 = vpop.permute.xlu0 %212  ;;  %v374_v60 = vpop.xlane.xlu1 %373 }
 0x35c   :  { %2278 = vrcp.f32 %v374_v60  ;;  %2047 = vmatpush3.msra.mxu1 %v213_v59 }
 0x35d   :  { %2056 = vmatprep.subr.mxu1 %v2332_v8 }
 0x362   :  { %v2277_v61 = vpop.eup %2276 }
 0x363   :  { %v211_v62 = vmul.f32 %v2277_v61, %v2269_v45  ;;  %v704_v63 = vpop.xlane.xlu1 %703 }
 0x365   :  { %2049 = vmatmul.mubr.msk.f32.vlgmr.msra.gmra.mrb[4].mxu1 %vm125_vm2, %v211_v62 }
 0x366   :  { %v2279_v0 = vpop.eup %2278  ;;  %2057 = vmatpush3.msra.mxu1 %v378_v57  ;;  %2058 = vmatprep.mubr.msk.f32.mxu1 %vm2333_vm1, %v2332_v8 }
 0x367   :  { %v376_v1 = vmul.f32 %v2279_v0, %v2271_v48  ;;  %v543_v2 = vpop.permute.xlu1 %542  ;;  %2066 = vmatprep.subr.mxu1 %v2332_v8 }
 0x369   :  { %2059 = vmatmul.mubr.msk.f32.vlgmr.msra.gmra.mrb[6].mxu1 %vm125_vm2, %v376_v1 }
 0x36a   :  { %2067 = vmatpush3.msra.mxu1 %v543_v2  ;;  %2068 = vmatprep.mubr.msk.f32.mxu1 %vm2333_vm1, %v2332_v8 }
 0x36b   :  { %2076 = vmatprep.subr.mxu1 %v2332_v8 }
 0x38c   :  { %v539_v3 = vpop.xlane.xlu0 %538 }
 0x38d   :  { %2280 = vrcp.f32 %v539_v3 }
 0x38e   :  { %2282 = vrcp.f32 %v704_v63 }
 0x390   :  { %v708_v11 = vpop.permute.xlu0 %707 }
 0x397   :  { %v2281_v4 = vpop.eup %2280 }
 0x398   :  { %v541_v6 = vmul.f32 %v2281_v4, %v2275_v55  ;;  %v2283_v9 = vpop.eup %2282 }
 0x399   :  { %v706_v13 = vmul.f32 %v2283_v9, %v2273_v50 }
 0x39a   :  { %2069 = vmatmul.mubr.msk.f32.vlgmr.msra.gmra.mrb[8].mxu1 %vm125_vm2, %v541_v6 }
 0x39b   :  { %2077 = vmatpush3.msra.mxu1 %v708_v11  ;;  %2078 = vmatprep.mubr.msk.f32.mxu1 %vm2333_vm1, %v2332_v8 }
 0x39c   :  { %2197 = vmatprep.subr.bf16.mxu1 %v2345_v19 }
 0x39e   :  { %2079 = vmatmul.mubr.msk.f32.vlgmr.msra.gmra.mrb[10].mxu1 %vm125_vm2, %v706_v13 }
 0x39f   :  { %2089 = vmatprep.mubr.msk.f32.mxu1 %vm2333_vm1, %v2332_v8  ;;  %2199 = vmatpush3.bf16.msra.mxu1 %v2198_v20 }
 0x3a0   :  { %2200 = vmatprep.subr.bf16.mxu1 %v2345_v19 }
 0x3a3   :  { %2202 = vmatpush3.bf16.msra.mxu1 %v2201_v22 }
 0x3a4   :  { %2092 = vmatprep.subr.mxu1 %v2332_v8 }
 0x438   :  { %v284_v23 = vpop.f32.mrb[4].mxu1 }
 0x439   :  { %v2050_v24 = vpop.f32.mrb[5].mxu1 }
 0x43c   :  { %v449_v25 = vpop.f32.mrb[6].mxu1 }
 0x43d   :  { %784 = vrot.lane.b32.xlu1 %v449_v25, %s2346_s8  ;;  %v2060_v26 = vpop.f32.mrb[7].mxu1 }
 0x46d   :  { %v614_v27 = vpop.f32.mrb[8].mxu1 }
 0x46e   :  { %788 = vrot.lane.b32.xlu0 %v614_v27, %s2347_s9  ;;  %v2070_v28 = vpop.f32.mrb[9].mxu1 }
 0x471   :  { %v779_v29 = vpop.f32.mrb[10].mxu1 }
 0x472   :  { %879 = vrot.lane.b32.xlu0 %v2432_v14, %s2334_s13  ;;  %792 = vrot.lane.b32.xlu1 %v779_v29, %s2348_s2  ;;  %v2080_v30 = vpop.f32.mrb[11].mxu1 }
 0x476   :  { %1043 = vrot.lane.b32.xlu0 %v2437_v16, %s2335_s14  ;;  %1045 = vrot.lane.b32.xlu1 %v2432_v14, %s2336_s6 }
 0x47a   :  { %1208 = vrot.lane.b32.xlu0 %v2437_v16, %s2338_s16  ;;  %1210 = vrot.lane.b32.xlu1 %v2432_v14, %s2337_s15 }
 0x47e   :  { %1373 = vrot.lane.b32.xlu0 %v2437_v16, %s2340_s18  ;;  %1375 = vrot.lane.b32.xlu1 %v2432_v14, %s2339_s17 }
 0x4af   :  { %v785_v31 = vpop.permute.xlu1 %784 }
 0x4b0   :  { %v795_v33 = vsel %vm125_vm2, %v284_v23, %v785_v31 }
 0x4e0   :  { %v789_v32 = vpop.permute.xlu0 %788 }
 0x4e1   :  { %v797_v34 = vsel %vm796_vm3, %v795_v33, %v789_v32 }
 0x4e4   :  { %v880_v35 = vpop.permute.xlu0 %879  ;;  %v793_v36 = vpop.permute.xlu1 %792 }
 0x4e5   :  { %v799_v37 = vsel %vm798_vm4, %v797_v34, %v793_v36 }
 0x4e6   :  { %2090 = vmatmul.mubr.msk.f32.vlgmr.msra.gmra.mrb[12].mxu1 %vm34_vm0, %v799_v37 }
 0x4e7   :  { %2093 = vmatpush3.xpose.msk.msra.mxu1 %vm125_vm2, %v880_v35  ;;  %2094 = vmatprep.mubr.msk.f32.mxu1 %vm2333_vm1, %v2332_v8 }
 0x4e8   :  { %v1044_v38 = vpop.permute.xlu0 %1043  ;;  %v1046_v39 = vpop.permute.xlu1 %1045  ;;  %2097 = vmatprep.subr.mxu1 %v2332_v8 }
 0x4e9   :  { %2103 = vmatpush3.xpose.msk.msra.mxu0 %vm125_vm2, %v1046_v39 }
 0x4ea   :  { %2095 = vmatmul.mubr.msk.f32.vlgmr.msra.gmra.mrb[14].mxu1 %vm125_vm2, %v2437_v16  ;;  %2112 = vmatprep.subr.mxu0 %v2332_v8 }
 0x4eb   :  { %2099 = vmatprep.mubr.msk.f32.mxu1 %vm2333_vm1, %v2332_v8 }
 0x4ec   :  { %2105 = vmatmul.mubr.msk.f32.vlgmr.msra.gmra.mrb[6].mxu0 %vm125_vm2, %v1044_v38  ;;  %v1211_v40 = vpop.permute.xlu1 %1210  ;;  %v1209_v41 = vpop.permute.xlu0 %1208 }
 0x4ed   :  { %2113 = vmatpush3.xpose.msk.msra.mxu0 %vm125_vm2, %v1211_v40  ;;  %2114 = vmatprep.mubr.msk.f32.mxu0 %vm2333_vm1, %v2332_v8 }
 0x4ee   :  { %2122 = vmatprep.subr.mxu0 %v2332_v8 }
 0x4f0   :  { %2115 = vmatmul.mubr.msk.f32.vlgmr.msra.gmra.mrb[8].mxu0 %vm125_vm2, %v1209_v41  ;;  %v1376_v42 = vpop.permute.xlu1 %1375  ;;  %v1374_v16 = vpop.permute.xlu0 %1373 }
 0x4f1   :  { %2123 = vmatpush3.xpose.msk.msra.mxu0 %vm125_vm2, %v1376_v42  ;;  %2124 = vmatprep.mubr.msk.f32.mxu0 %vm2333_vm1, %v2332_v8 }
 0x4f2   :  { %2203 = vmatprep.subr.bf16.mxu0 %v2345_v19 }
 0x4f4   :  { %2125 = vmatmul.mubr.msk.f32.vlgmr.msra.gmra.mrb[10].mxu0 %vm125_vm2, %v1374_v16  ;;  %v1635_v16 = vsub.s32 1, %v2419_v10 }
 0x4f5   :  { %2205 = vmatpush3.bf16.msra.mxu0 %v2198_v20  ;;  %2140 = vmatprep.mubr.msk.f32.mxu0 %vm2333_vm1, %v2332_v8 }
 0x4f6   :  { %2206 = vmatprep.subr.bf16.mxu0 %v2345_v19 }
 0x4f9   :  { %2208 = vmatpush3.bf16.msra.mxu0 %v2201_v22 }
 0x5b9   :  { %v873_v43 = vpop.f32.mrb[12].mxu1 }
 0x5ba   :  { %877 = vst.msk [vmem:[#allocation2] sm:$0xff] %vm34_vm0, %v873_v43  ;;  %v2091_v44 = vpop.f32.mrb[13].mxu1 }
 0x5bd   :  { %v952_v45 = vpop.f32.mrb[14].mxu1 }
 0x5be   :  { %v2096_v46 = vpop.f32.mrb[15].mxu1  ;;  %v956_v47 = vsel %vm125_vm2, %v952_v45, -inf }
 0x5bf   :  { %v1117_v48 = vpop.f32.mrb[6].mxu0  ;;  %957 = vmax.xlane.f32.xlu1 %v956_v47 }
 0x5c0   :  { %v2106_v49 = vpop.f32.mrb[7].mxu0  ;;  %v1121_v50 = vsel %vm125_vm2, %v1117_v48, -inf }
 0x5c1   :  { %1122 = vmax.xlane.f32.xlu0 %v1121_v50  ;;  %v1631_v43 = vld [vmem:[#allocation2] sm:$0xff] }
 0x5c3   :  { %v1282_v51 = vpop.f32.mrb[8].mxu0 }
 0x5c4   :  { %v2116_v52 = vpop.f32.mrb[9].mxu0  ;;  %v1286_v53 = vsel %vm125_vm2, %v1282_v51, -inf }
 0x5c5   :  { %1287 = vmax.xlane.f32.xlu0 %v1286_v53 }
 0x5c7   :  { %v1447_v54 = vpop.f32.mrb[10].mxu0 }
 0x5c8   :  { %v2126_v55 = vpop.f32.mrb[11].mxu0  ;;  %v1451_v56 = vsel %vm125_vm2, %v1447_v54, -inf }
 0x5c9   :  { %1452 = vmax.xlane.f32.xlu1 %v1451_v56 }
 0x64c   :  { %v958_v57 = vpop.xlane.xlu1 %957 }
 0x64d   :  { %v959_v60 = vsub.f32 %v952_v45, %v958_v57 }
 0x64e   :  { %v1123_v58 = vpop.xlane.xlu0 %1122 }
 0x64f   :  { %v1124_v59 = vsub.f32 %v1117_v48, %v1123_v58  ;;  %v960_v0 = vmul.f32 1.442695, %v959_v60 }
 0x651   :  { %v1125_v61 = vmul.f32 1.442695, %v1124_v59 }
 0x652   :  { %v1288_v62 = vpop.xlane.xlu0 %1287 }
 0x653   :  { %2284 = vpow2.f32 %v1125_v61  ;;  %v1289_v63 = vsub.f32 %v1282_v51, %v1288_v62  ;;  %v1670_v61 = vsub.s32 2, %v2419_v10 }
 0x655   :  { %v1290_v1 = vmul.f32 1.442695, %v1289_v63  ;;  %v1676_v63 = vsub.s32 3, %v2419_v10 }
 0x656   :  { %v1453_v2 = vpop.xlane.xlu1 %1452 }
 0x657   :  { %2286 = vpow2.f32 %v1290_v1  ;;  %v1454_v3 = vsub.f32 %v1447_v54, %v1453_v2 }
 0x658   :  { %2288 = vpow2.f32 %v960_v0  ;;  %v2608_v0 = vrot.slane %v2429_v12, %v1670_v61  ;;  %v1792_v61 = vsub.s32 4, %v2419_v10 }
 0x659   :  { %v1455_v4 = vmul.f32 1.442695, %v1454_v3  ;;  %v2611_v3 = vrot.slane %v2429_v12, %v1676_v63 }
 0x65b   :  { %2290 = vpow2.f32 %v1455_v4 }
 0x65d   :  { %v2285_v6 = vpop.eup %2284 }
 0x65e   :  { %v1127_v9 = vsel %vm125_vm2, %v2285_v6, 0.0 }
 0x65f   :  { %1128 = vadd.xlane.f32.xlu1 %v1127_v9 }
 0x661   :  { %v2287_v11 = vpop.eup %2286 }
 0x662   :  { %v1292_v13 = vsel %vm125_vm2, %v2287_v11, 0.0  ;;  %v2289_v15 = vpop.eup %2288 }
 0x663   :  { %1293 = vadd.xlane.f32.xlu0 %v1292_v13  ;;  %v962_v18 = vsel %vm125_vm2, %v2289_v15, 0.0 }
 0x665   :  { %v2291_v17 = vpop.eup %2290 }
 0x666   :  { %v1457_v19 = vsel %vm125_vm2, %v2291_v17, 0.0 }
 0x667   :  { %963 = vadd.xlane.f32.xlu0 %v962_v18  ;;  %1458 = vadd.xlane.f32.xlu1 %v1457_v19 }
 0x678   :  { %1132 = vrot.lane.b32.xlu1 %v2432_v14, %s2341_s19 }
 0x67c   :  { %1297 = vrot.lane.b32.xlu1 %v2432_v14, %s2343_s21 }
 0x67d   :  { %967 = vrot.lane.b32.xlu0 %v2432_v14, %s2342_s20 }
 0x681   :  { %1462 = vrot.lane.b32.xlu0 %v2432_v14, %s2344_s22 }
 0x6ec   :  { %v1129_v21 = vpop.xlane.xlu1 %1128 }
 0x6f0   :  { %v1294_v20 = vpop.xlane.xlu0 %1293 }
 0x6f4   :  { %v964_v22 = vpop.xlane.xlu0 %963  ;;  %v1459_v24 = vpop.xlane.xlu1 %1458 }
 0x6f5   :  { %2292 = vrcp.f32 %v964_v22  ;;  %v1680_v22 = vld [vmem:[%s2717_s3] sm:$0xff] }
 0x6f6   :  { %2294 = vrcp.f32 %v1129_v21 }
 0x6f7   :  { %2296 = vrcp.f32 %v1294_v20 }
 0x6f8   :  { %v968_v23 = vpop.permute.xlu0 %967  ;;  %2298 = vrcp.f32 %v1459_v24  ;;  %v1133_v27 = vpop.permute.xlu1 %1132  ;;  %v1682_v24 = vld [vmem:[%s2717_s3 + $0x10] sm:$0xff] }
 0x6f9   :  { %2098 = vmatpush3.msra.mxu1 %v968_v23 }
 0x6fa   :  { %2107 = vmatprep.subr.mxu1 %v2332_v8 }
 0x6fc   :  { %v1298_v30 = vpop.permute.xlu1 %1297  ;;  %v1463_v33 = vpop.permute.xlu0 %1462 }
 0x6ff   :  { %v2293_v25 = vpop.eup %2292 }
 0x700   :  { %v966_v26 = vmul.f32 %v2293_v25, %v2289_v15  ;;  %v2295_v28 = vpop.eup %2294  ;;  %v1683_v25 = vld [vmem:[%s2717_s3 + $0x18] sm:$0xff] }
 0x701   :  { %v1131_v14 = vmul.f32 %v2295_v28, %v2285_v6  ;;  %v2297_v29 = vpop.eup %2296  ;;  %v1775_v28 = vld [vmem:[%s2719_s5 + $0x8] sm:$0xff] }
 0x702   :  { %2100 = vmatmul.mubr.msk.f32.vlgmr.msra.gmra.mrb[16].mxu1 %vm125_vm2, %v966_v26  ;;  %v1296_v31 = vmul.f32 %v2297_v29, %v2287_v11  ;;  %v2299_v32 = vpop.eup %2298  ;;  %v2213_v26 = vpack.c.bf16 %v1683_v25, %v1682_v24 }
 0x703   :  { %2108 = vmatpush3.msra.mxu1 %v1133_v27  ;;  %2109 = vmatprep.mubr.msk.f32.mxu1 %vm2333_vm1, %v2332_v8  ;;  %v1461_v34 = vmul.f32 %v2299_v32, %v2291_v17  ;;  %v1774_v27 = vld [vmem:[%s2719_s5] sm:$0xff] }
 0x704   :  { %2117 = vmatprep.subr.mxu1 %v2332_v8  ;;  %v2217_v29 = vpack.c.bf16 %v1775_v28, %v1774_v27  ;;  %v1778_v32 = vld [vmem:[%s2719_s5 + $0x20] sm:$0xff] }
 0x706   :  { %2110 = vmatmul.mubr.msk.f32.vlgmr.msra.gmra.mrb[18].mxu1 %vm125_vm2, %v1131_v14  ;;  %v1776_v14 = vld [vmem:[%s2719_s5 + $0x10] sm:$0xff]  ;;  %2218 = vmatprep.subr.bf16.mxu0 %v2217_v29 }
 0x707   :  { %2118 = vmatpush3.msra.mxu1 %v1298_v30  ;;  %2119 = vmatprep.mubr.msk.f32.mxu1 %vm2333_vm1, %v2332_v8  ;;  %v1777_v30 = vld [vmem:[%s2719_s5 + $0x18] sm:$0xff] }
 0x708   :  { %2127 = vmatprep.subr.mxu1 %v2332_v8 }
 0x70a   :  { %2120 = vmatmul.mubr.msk.f32.vlgmr.msra.gmra.mrb[20].mxu1 %vm125_vm2, %v1296_v31  ;;  %v2221_v31 = vpack.c.bf16 %v1777_v30, %v1776_v14  ;;  %v1899_v14 = vsub.s32 5, %v2419_v10 }
 0x70b   :  { %2128 = vmatpush3.msra.mxu1 %v1463_v33  ;;  %2129 = vmatprep.mubr.msk.f32.mxu1 %vm2333_vm1, %v2332_v8  ;;  %v1636_v8 = vrot.slane %v2429_v12, %v1635_v16  ;;  %v1779_v33 = vld [vmem:[%s2719_s5 + $0x28] sm:$0xff] }
 0x70c   :  { %v1900_v30 = vrot.slane %v2429_v12, %v1899_v14 }
 0x70d   :  { %v1637_v44 = vadd.f32 %v1636_v8, %v1631_v43  ;;  %v1787_v43 = vld [vmem:[%s2719_s5 + $0x68] sm:$0xff] }
 0x70e   :  { %2130 = vmatmul.mubr.msk.f32.vlgmr.msra.gmra.mrb[22].mxu1 %vm125_vm2, %v1461_v34  ;;  %v2225_v34 = vpack.c.bf16 %v1779_v33, %v1778_v32 }
 0x70f   :  { %v1639_v45 = vadd.f32 %v1637_v44, %v2406_v5 }
 0x711   :  { %v1641_v46 = vsel %vm34_vm0, %v1639_v45, 0.0 }
 0x7d5   :  { %v1039_v35 = vpop.f32.mrb[16].mxu1 }
 0x7d6   :  { %v2101_v36 = vpop.f32.mrb[17].mxu1 }
 0x7d7   :  { %v1781_v36 = vld [vmem:[%s2719_s5 + $0x38] sm:$0xff] }
 0x7d9   :  { %v1204_v37 = vpop.f32.mrb[18].mxu1 }
 0x7da   :  { %1539 = vrot.lane.b32.xlu1 %v1204_v37, %s2346_s8  ;;  %v2111_v38 = vpop.f32.mrb[19].mxu1 }
 0x7db   :  { %v1782_v38 = vld [vmem:[%s2719_s5 + $0x40] sm:$0xff] }
 0x7dd   :  { %v1369_v39 = vpop.f32.mrb[20].mxu1 }
 0x7de   :  { %1543 = vrot.lane.b32.xlu0 %v1369_v39, %s2347_s9  ;;  %v2121_v40 = vpop.f32.mrb[21].mxu1  ;;  %v1783_v39 = vld [vmem:[%s2719_s5 + $0x48] sm:$0xff] }
 0x7df   :  { %v2233_v40 = vpack.c.bf16 %v1783_v39, %v1782_v38 }
 0x7e1   :  { %v1534_v41 = vpop.f32.mrb[22].mxu1 }
 0x7e2   :  { %1547 = vrot.lane.b32.xlu1 %v1534_v41, %s2348_s2  ;;  %v2131_v42 = vpop.f32.mrb[23].mxu1  ;;  %v1784_v41 = vld [vmem:[%s2719_s5 + $0x50] sm:$0xff] }
 0x7e3   :  { %v1785_v42 = vld [vmem:[%s2719_s5 + $0x58] sm:$0xff] }
 0x7e4   :  { %v2237_v16 = vpack.c.bf16 %v1785_v42, %v1784_v41 }
 0x7fd   :  { %1642 = vadd.xlane.f32.xlu0 %v1641_v46 }
 0x84c   :  { %v1540_v47 = vpop.permute.xlu1 %1539 }
 0x84d   :  { %v1550_v49 = vsel %vm125_vm2, %v1039_v35, %v1540_v47  ;;  %v1780_v35 = vld [vmem:[%s2719_s5 + $0x30] sm:$0xff] }
 0x84e   :  { %v2229_v37 = vpack.c.bf16 %v1781_v36, %v1780_v35 }
 0x850   :  { %v1544_v48 = vpop.permute.xlu0 %1543 }
 0x851   :  { %v1551_v50 = vsel %vm796_vm3, %v1550_v49, %v1544_v48 }
 0x854   :  { %v1548_v51 = vpop.permute.xlu1 %1547 }
 0x855   :  { %v1552_v52 = vsel %vm798_vm4, %v1551_v50, %v1548_v51 }
 0x856   :  { %2141 = vmatmul.mubr.msk.f32.vlgmr.msra.gmra.mrb[12].mxu0 %vm34_vm0, %v1552_v52  ;;  %v1788_v52 = vld [vmem:[%s2719_s5 + $0x70] sm:$0xff] }
 0x857   :  { %2220 = vmatpush3.bf16.msra.mxu0 %v2217_v29  ;;  %v1905_v29 = vsub.s32 6, %v2419_v10 }
 0x858   :  { %2222 = vmatprep.subr.bf16.mxu0 %v2221_v31 }
 0x85b   :  { %2224 = vmatpush3.bf16.msra.mxu0 %v2221_v31 }
 0x85c   :  { %2226 = vmatprep.subr.bf16.mxu0 %v2225_v34 }
 0x85f   :  { %2228 = vmatpush3.bf16.msra.mxu0 %v2225_v34  ;;  %v1906_v34 = vrot.slane %v2429_v12, %v1905_v29 }
 0x860   :  { %2230 = vmatprep.subr.bf16.mxu0 %v2229_v37 }
 0x863   :  { %2232 = vmatpush3.bf16.msra.mxu0 %v2229_v37 }
 0x864   :  { %2234 = vmatprep.subr.bf16.mxu0 %v2233_v40 }
 0x867   :  { %2236 = vmatpush3.bf16.msra.mxu0 %v2233_v40 }
 0x868   :  { %2238 = vmatprep.subr.bf16.mxu0 %v2237_v16 }
 0x86b   :  { %2240 = vmatpush3.bf16.msra.mxu0 %v2237_v16 }
 0x88a   :  { %v1643_v53 = vpop.xlane.xlu0 %1642 }
 0x88b   :  { %v1648_v54 = vmul.f32 0.03125, %v1643_v53  ;;  %v1789_v53 = vld [vmem:[%s2719_s5 + $0x78] sm:$0xff] }
 0x88d   :  { %v1650_v55 = vsub.f32 %v1639_v45, %v1648_v54  ;;  %v2245_v54 = vpack.c.bf16 %v1789_v53, %v1788_v52 }
 0x88f   :  { %v1652_v56 = vmul.f32 %v1650_v55, %v1650_v55 }
 0x891   :  { %v1654_v5 = vsel %vm34_vm0, %v1652_v56, 0.0 }
 0x892   :  { %1655 = vadd.xlane.f32.xlu0 %v1654_v5 }
 0x91f   :  { %v1656_v57 = vpop.xlane.xlu0 %1655 }
 0x920   :  { %v1660_v58 = vmul.f32 0.03125, %v1656_v57 }
 0x922   :  { %v1662_v59 = vadd.f32 1e-05, %v1660_v58 }
 0x924   :  { %2300 = vrsqrt.f32 %v1662_v59 }
 0x929   :  { %v1626_v60 = vpop.f32.mrb[12].mxu0 }
 0x92a   :  { %1630 = vst.msk [vmem:[#allocation2 + $0x8] sm:$0xff] %vm34_vm0, %v1626_v60  ;;  %v2142_v62 = vpop.f32.mrb[13].mxu0 }
 0x92b   :  { %v1793_v62 = vrot.slane %v2429_v12, %v1792_v61 }
 0x92e   :  { %v2301_v1 = vpop.eup %2300 }
 0x92f   :  { %v1666_v2 = vmul.f32 %v2301_v1, %v1650_v55  ;;  %v1955_v55 = vld [vmem:[%s2718_s4] ss:$0 sm:$0xff]  ;;  %s2349_s4 = smov [#allocation3]  }
 0x931   :  { %v1672_v4 = vmul.f32 %v2608_v0, %v1666_v2  ;;  %v1632_v6 = vld [vmem:[#allocation2 + $0x8] sm:$0xff] }
 0x932   :  { %v1638_v9 = vadd.f32 %v1636_v8, %v1632_v6  ;;  %v1786_v8 = vld [vmem:[%s2719_s5 + $0x60] sm:$0xff]  ;;  %s1916_s5 = sshll.u32 %s2349_s4, 4  ;;  %s1917_s5 = int_to_ptr.vmem [resolvable:$true] %s1916_s5 }
 0x933   :  { %v2615_v11 = vadd.f32 %v2611_v3, %v1672_v4  ;;  %v2241_v44 = vpack.c.bf16 %v1787_v43, %v1786_v8  ;;  %s2308_s22 = scalar_lea.vmem %s1917_s5, 256  ;;  %p2313_p1 = scmp.lt.s32.totalorder %s1917_s5, %s1917_s5 }
 0x934   :  { %v1640_v13 = vadd.f32 %v1638_v9, %v2413_v7  ;;  %v1681_v7 = vld [vmem:[%s2717_s3 + $0x8] sm:$0xff]  ;;  %p2309_p0 = scmp.ne.s32.totalorder %s1917_s5, %s2308_s22  ;;  %p2314_p2 = scmp.lt.s32.totalorder %s2308_s22, %s2308_s22 }
 0x935   :  { %2151 = vmatprep.mubr.msk.f32.mxu1 %vm34_vm0, %v2615_v11  ;;  %v2209_v23 = vpack.c.bf16 %v1681_v7, %v1680_v22  ;;  %2242 = vmatprep.subr.bf16.mxu0 %v2241_v44 }
 0x936   :  { %v1644_v15 = vsel %vm34_vm0, %v1640_v13, 0.0  ;;  %2244 = vmatpush3.bf16.msra.mxu0 %v2241_v44  ;;  %p2315_p3 = por %p2314_p2, %p2313_p1 }
 0x937   :  { %1645 = vadd.xlane.f32.xlu1 %v1644_v15  ;;  %2210 = vmatprep.subr.bf16.mxu1 %v2209_v23 }
 0x938   :  { %2212 = vmatpush3.bf16.msra.mxu1 %v2209_v23  ;;  %2246 = vmatprep.subr.bf16.mxu0 %v2245_v54  ;;  %p2316_p4 = pnand %p2315_p3, %p2309_p0 }
 0x939   :  { %2214 = vmatprep.subr.bf16.mxu1 %v2213_v26 }
 0x93a   :  { %2248 = vmatpush3.bf16.msra.mxu0 %v2245_v54 }
 0x93c   :  { %2216 = vmatpush3.bf16.msra.mxu1 %v2213_v26 }
 0x9c4   :  { %v1646_v17 = vpop.xlane.xlu1 %1645 }
 0x9c5   :  { %v1649_v18 = vmul.f32 0.03125, %v1646_v17 }
 0x9c7   :  { %v1651_v19 = vsub.f32 %v1640_v13, %v1649_v18 }
 0x9c9   :  { %v1653_v20 = vmul.f32 %v1651_v19, %v1651_v19 }
 0x9cb   :  { %v1657_v21 = vsel %vm34_vm0, %v1653_v20, 0.0 }
 0x9cc   :  { %1658 = vadd.xlane.f32.xlu0 %v1657_v21 }
 0xa59   :  { %v1659_v45 = vpop.xlane.xlu0 %1658 }
 0xa5a   :  { %v1661_v46 = vmul.f32 0.03125, %v1659_v45 }
 0xa5c   :  { %v1663_v47 = vadd.f32 1e-05, %v1661_v46 }
 0xa5e   :  { %2302 = vrsqrt.f32 %v1663_v47 }
 0xa68   :  { %v2303_v48 = vpop.eup %2302 }
 0xa69   :  { %v1667_v49 = vmul.f32 %v2303_v48, %v1651_v19 }
 0xa6b   :  { %v1673_v50 = vmul.f32 %v2608_v0, %v1667_v49 }
 0xa6d   :  { %v1679_v51 = vadd.f32 %v2611_v3, %v1673_v50 }
 0xa6f   :  { %2152 = vmatmul.mubr.msk.f32.vlgmr.msra.gmra.mrb[24].mxu1 %vm34_vm0, %v1679_v51 }
 0xb42   :  { %v2153_v56 = vpop.f32.mrb[24].mxu1 }
 0xb43   :  { %v1769_v5 = vadd.f32 %v2153_v56, %v1955_v55  ;;  %v1763_v57 = vpop.f32.mrb[25].mxu1 }
 0xb44   :  { %v1764_v58 = vadd.f32 %v1955_v55, %v1763_v57 }
 0xb45   :  { %v1773_v60 = vmax.f32 %v1769_v5, 0.0 }
 0xb46   :  { %v1772_v59 = vmax.f32 %v1764_v58, 0.0 }
 0xb48   :  { %2186 = vmatprep.mubr.f32.mxu0 %v1772_v59 }
 0xb49   :  { %2187 = vmatmul.mubr.f32.vlgmr.msra.gmra.mrb[14].mxu0 %v1773_v60 }
 0xc1c   :  { %v2188_v63 = vpop.f32.mrb[14].mxu0 }
 0xc1d   :  { %v1866_v0 = vadd.f32 %v2188_v63, %v1793_v62  ;;  %v1860_v1 = vpop.f32.mrb[15].mxu0 }
 0xc1e   :  { %v1861_v2 = vadd.f32 %v1860_v1, %v1793_v62 }
 0xc1f   :  { %v1870_v3 = vadd.f32 %v1866_v0, %v1679_v51 }
 0xc20   :  { %v1869_v4 = vadd.f32 %v1861_v2, %v2615_v11 }
 0xc21   :  { %v1874_v6 = vsel %vm34_vm0, %v1870_v3, 0.0 }
 0xc22   :  { %1875 = vadd.xlane.f32.xlu0 %v1874_v6  ;;  %v1871_v9 = vsel %vm34_vm0, %v1869_v4, 0.0 }
 0xc23   :  { %1872 = vadd.xlane.f32.xlu1 %v1871_v9 }
 0xcaf   :  { %v1876_v13 = vpop.xlane.xlu0 %1875 }
 0xcb0   :  { %v1878_v15 = vmul.f32 0.03125, %v1876_v13  ;;  %v1873_v17 = vpop.xlane.xlu1 %1872 }
 0xcb1   :  { %v1877_v18 = vmul.f32 0.03125, %v1873_v17 }
 0xcb2   :  { %v1880_v19 = vsub.f32 %v1870_v3, %v1878_v15 }
 0xcb3   :  { %v1879_v20 = vsub.f32 %v1869_v4, %v1877_v18 }
 0xcb4   :  { %v1882_v21 = vmul.f32 %v1880_v19, %v1880_v19 }
 0xcb5   :  { %v1881_v22 = vmul.f32 %v1879_v20, %v1879_v20 }
 0xcb6   :  { %v1886_v7 = vsel %vm34_vm0, %v1882_v21, 0.0 }
 0xcb7   :  { %1887 = vadd.xlane.f32.xlu0 %v1886_v7  ;;  %v1883_v23 = vsel %vm34_vm0, %v1881_v22, 0.0 }
 0xcb8   :  { %1884 = vadd.xlane.f32.xlu1 %v1883_v23 }
 0xd44   :  { %v1888_v11 = vpop.xlane.xlu0 %1887 }
 0xd45   :  { %v1890_v24 = vmul.f32 0.03125, %v1888_v11  ;;  %v1885_v25 = vpop.xlane.xlu1 %1884 }
 0xd46   :  { %v1889_v26 = vmul.f32 0.03125, %v1885_v25 }
 0xd47   :  { %v1892_v27 = vadd.f32 1e-05, %v1890_v24 }
 0xd48   :  { %v1891_v28 = vadd.f32 1e-05, %v1889_v26 }
 0xd49   :  { %2304 = vrsqrt.f32 %v1892_v27 }
 0xd4a   :  { %2306 = vrsqrt.f32 %v1891_v28 }
 0xd53   :  { %v2305_v31 = vpop.eup %2304 }
 0xd54   :  { %v2307_v32 = vpop.eup %2306  ;;  %v1896_v33 = vmul.f32 %v2305_v31, %v1880_v19 }
 0xd55   :  { %v1895_v35 = vmul.f32 %v2307_v32, %v1879_v20 }
 0xd56   :  { %v1902_v36 = vmul.f32 %v1900_v30, %v1896_v33 }
 0xd57   :  { %v1901_v37 = vmul.f32 %v1900_v30, %v1895_v35 }
 0xd58   :  { %v1908_v38 = vadd.f32 %v1906_v34, %v1902_v36 }
 0xd59   :  { %v1907_v39 = vadd.f32 %v1906_v34, %v1901_v37 }
 0xd5a   :  { %1910 = vst.msk [vmem:[#allocation3 + $0x8] sm:$0xff] %vm34_vm0, %v1908_v38 }
 0xd5b   :  { %1909 = vst.msk [vmem:[#allocation3] sm:$0xff] %vm34_vm0, %v1907_v39 }
 0xd5c   :  { %2319 = shalt.err (!%p2316_p4)
}
 0xd5d   :  { %s2320_s24 = scalar_lea.hbm %s2721_s7, 256 }
 0xd5e   :  { %p2321_p5 = scmp.ne.s32.totalorder %s2721_s7, %s2320_s24  ;;  %p2324_p6 = scmp.lt.u32.totalorder %s2320_s24, %s2721_s7 }
 0xd60   :  { %p2326_p7 = pnand %p2324_p6, %p2321_p5 }
 0xd62   :  { %2329 = shalt.err (!%p2326_p7)
}
 0xd63   :  { %s2350_s29 = smov 128  }
 0xd64   :  { %1922 = dma.vmem_to_hbm [thread:$0]  %s1917_s5, 256, %s2721_s7, [#allocation4], %s2350_s29, %s2350_s29, %s2346_s8  }
 0xd65   :  { %2330 = dma.done.wait [#allocation4], 256  }
 0xd66   :  { %2331 = vsyncadd [#allocation4], 4294967040 }
 0xd67   :  { %1926 = vsyncpa [#allocation4], 1 }

</bundles_post_ra>
